<compile_context>
chip_gen: v7x
topology: tpu7x:2x2x1
jax: 0.10.0
libtpu: 0.0.40
codegen_flags: <defaults>
</compile_context>

<pallas_src>
import functools
import numpy as np

import jax
import jax.numpy as jnp
from jax.experimental import pallas as pl
from jax.experimental.pallas import tpu as pltpu


def _round_up(x, m):
    return ((x + m - 1) // m) * m


def _make_mlp_kernel(num_linear, compute_dtype):
    """Kernel for `num_linear` Linear layers with ReLU between all but the last.

    Per grid step the refs are:
      (x_ref[TB, in_pad] bf16, w0, b0, ..., w{L-1}, b{L-1}, o_ref[TB, out_pad] f32)
    Weights are bf16, biases f32. Matmuls accumulate in f32 on the MXU; the
    bias add / ReLU stay in f32 on the VPU.
    """

    def kernel(*refs):
        x_ref = refs[0]
        o_ref = refs[-1]
        h = x_ref[...]                       # bf16 activation tile
        for i in range(num_linear):
            w = refs[1 + 2 * i][...]         # (in, out) bf16, VMEM-resident
            b = refs[2 + 2 * i][...]         # (1, out)  f32,  VMEM-resident
            h = jnp.dot(h.astype(compute_dtype), w,
                        preferred_element_type=jnp.float32) + b
            if i < num_linear - 1:           # ReLU after all but the last layer
                h = jnp.maximum(h, 0.0)
        o_ref[...] = h.astype(o_ref.dtype)

    return kernel


def net_forward(obs, params, state=None, *, batch_tile=256,
                compute_dtype=jnp.bfloat16):
    """Pallas equivalent of Net.forward.

    obs:    (batch, *state_shape) float32
    params: list of (W, b) with W: (in, out) f32, b: (1, out) f32
    Returns (logits, state) just like the PyTorch module.
    """
    batch = obs.shape[0]
    x = obs.reshape(batch, -1).astype(jnp.float32)   # flatten in plain JAX
    in_dim = x.shape[1]
    num_linear = len(params)
    out_dim = params[-1][0].shape[1]

    # ---- lane-dense input: pad feature dim up to a multiple of 128 ----
    in_pad = _round_up(in_dim, 128)
    if in_pad != in_dim:
        x = jnp.pad(x, ((0, 0), (0, in_pad - in_dim)))

    # ---- batch tiling: sublane-aligned tile, grid over batch ----
    tb = min(batch_tile, _round_up(batch, 8))
    padded_batch = _round_up(batch, tb)
    if padded_batch != batch:
        x = jnp.pad(x, ((0, padded_batch - batch), (0, 0)))
    num_tiles = padded_batch // tb

    # ---- lane-dense output: pad action features up to a multiple of 128 ----
    out_pad = _round_up(out_dim, 128)

    # ---- flatten args: bf16 activations/weights, f32 biases ----
    flat_args = [x.astype(compute_dtype)]
    in_specs = [pl.BlockSpec((tb, in_pad), lambda i: (i, 0))]
    for li, (w, b) in enumerate(params):
        if li == 0 and in_pad != in_dim:
            # Zero-pad the fan-in rows; padded x columns are zero so this is exact.
            w = jnp.pad(w, ((0, in_pad - in_dim), (0, 0)))
        if li == num_linear - 1 and out_pad != out_dim:
            w = jnp.pad(w, ((0, 0), (0, out_pad - out_dim)))
            b = jnp.pad(b, ((0, 0), (0, out_pad - out_dim)))
        w = w.astype(compute_dtype)
        b = b.astype(jnp.float32)
        flat_args += [w, b]
        # Constant index_map -> parameters fetched once, resident across grid steps.
        in_specs += [pl.BlockSpec(w.shape, lambda i: (0, 0)),
                     pl.BlockSpec(b.shape, lambda i: (0, 0))]

    out_specs = pl.BlockSpec((tb, out_pad), lambda i: (i, 0))

    # Advisory scheduler hint (tiny latency-bound kernel).
    flops = 2 * padded_batch * sum(int(w.shape[0]) * int(w.shape[1])
                                   for (w, _) in params)
    bytes_accessed = (
        padded_batch * in_pad * jnp.dtype(compute_dtype).itemsize
        + sum(int(np.prod(w.shape)) * jnp.dtype(compute_dtype).itemsize
              + int(np.prod(b.shape)) * 4 for (w, b) in params)
        + padded_batch * out_pad * 4)
    cost = pl.CostEstimate(flops=flops, transcendentals=0,
                           bytes_accessed=bytes_accessed)

    kernel = _make_mlp_kernel(num_linear, compute_dtype)

    logits_padded = pl.pallas_call(
        kernel,
        out_shape=jax.ShapeDtypeStruct((padded_batch, out_pad), jnp.float32),
        grid=(num_tiles,),
        in_specs=in_specs,
        out_specs=out_specs,
        compiler_params=pltpu.CompilerParams(
            dimension_semantics=("parallel",)),   # megacore split on v7x
        cost_estimate=cost,
    )(*flat_args)

    logits = logits_padded[:batch, :out_dim]
    return logits, state


def init_params(key, state_shape, action_shape, nlayers, hidden=256):
    """Deterministic PyTorch-Linear-style init (uniform +/- 1/sqrt(fan_in))."""
    in_dim = int(np.prod(state_shape))
    out_dim = int(np.prod(action_shape))
    dims = [in_dim] + [hidden] * (nlayers + 1) + [out_dim]

    params = []
    for i in range(len(dims) - 1):
        fan_in, fan_out = dims[i], dims[i + 1]
        key, kw, kb = jax.random.split(key, 3)
        bound = 1.0 / np.sqrt(fan_in)
        w = jax.random.uniform(kw, (fan_in, fan_out), jnp.float32,
                               minval=-bound, maxval=bound)
        b = jax.random.uniform(kb, (1, fan_out), jnp.float32,
                               minval=-bound, maxval=bound)
        params.append((w, b))
    return params


def _ref_forward(obs, params, compute_dtype=jnp.bfloat16):
    """Pure-JAX reference with the same bf16-in / f32-accumulate numerics."""
    h = obs.reshape(obs.shape[0], -1).astype(jnp.float32)
    for i, (w, b) in enumerate(params):
        h = jnp.dot(h.astype(compute_dtype), w.astype(compute_dtype),
                    preferred_element_type=jnp.float32) + b
        if i < len(params) - 1:
            h = jnp.maximum(h, 0.0)
    return h


if __name__ == "__main__":
    # Small, module-consistent shapes.
    state_shape = (4, 4)      # prod = 16 input features
    action_shape = (4,)       # 4 actions
    nlayers = 2

    key = jax.random.PRNGKey(0)
    key, kobs_small, kobs_big = jax.random.split(key, 3)

    params = init_params(key, state_shape, action_shape, nlayers)
    fwd = jax.jit(functools.partial(net_forward, params=params))

    # Toy batch (pads up to one 8-row tile).
    obs_small = jax.random.normal(kobs_small, (2,) + state_shape,
                                  dtype=jnp.float32)
    logits_small, state = fwd(obs_small)
    logits_small = jax.block_until_ready(logits_small)
    assert logits_small.shape == (2, int(np.prod(action_shape)))
    assert state is None
    np.testing.assert_allclose(np.asarray(logits_small),
                               np.asarray(_ref_forward(obs_small, params)),
                               rtol=1e-3, atol=1e-3)

    # RL-sized batch that exercises the batch grid (2 tiles of 256, padded).
    obs_big = jax.random.normal(kobs_big, (300,) + state_shape,
                                dtype=jnp.float32)
    logits_big, _ = fwd(obs_big)
    logits_big = jax.block_until_ready(logits_big)
    assert logits_big.shape == (300, int(np.prod(action_shape)))
    np.testing.assert_allclose(np.asarray(logits_big),
                               np.asarray(_ref_forward(obs_big, params)),
                               rtol=1e-3, atol=1e-3)

    print("KERNEL_OK")
</pallas_src>

<mosaic_0001>
module attributes {stable_mosaic.version = 11 : i64} {
  func.func @kernel(%arg0: i32, %arg1: memref<8x128xbf16, #tpu.memory_space<vmem>>, %arg2: memref<128x256xbf16, #tpu.memory_space<vmem>>, %arg3: memref<1x256xf32, #tpu.memory_space<vmem>>, %arg4: memref<256x256xbf16, #tpu.memory_space<vmem>>, %arg5: memref<1x256xf32, #tpu.memory_space<vmem>>, %arg6: memref<256x256xbf16, #tpu.memory_space<vmem>>, %arg7: memref<1x256xf32, #tpu.memory_space<vmem>>, %arg8: memref<256x128xbf16, #tpu.memory_space<vmem>>, %arg9: memref<1x128xf32, #tpu.memory_space<vmem>>, %arg10: memref<8x128xf32, #tpu.memory_space<vmem>>) attributes {dimension_semantics = [#tpu.dimension_semantics<parallel>], iteration_bounds = array<i64: 1>, scalar_prefetch = 0 : i64, scratch_operands = 0 : i64, tpu.core_type = #tpu.core_type<tc>, window_params = [{transform_indices = @transform_0, window_bounds = array<i64: 8, 128>}, {pipeline_mode = #tpu.pipeline_mode<synchronous>, transform_indices = @transform_1, window_bounds = array<i64: 128, 256>}, {pipeline_mode = #tpu.pipeline_mode<synchronous>, transform_indices = @transform_2, window_bounds = array<i64: 1, 256>}, {pipeline_mode = #tpu.pipeline_mode<synchronous>, transform_indices = @transform_3, window_bounds = array<i64: 256, 256>}, {pipeline_mode = #tpu.pipeline_mode<synchronous>, transform_indices = @transform_4, window_bounds = array<i64: 1, 256>}, {pipeline_mode = #tpu.pipeline_mode<synchronous>, transform_indices = @transform_5, window_bounds = array<i64: 256, 256>}, {pipeline_mode = #tpu.pipeline_mode<synchronous>, transform_indices = @transform_6, window_bounds = array<i64: 1, 256>}, {pipeline_mode = #tpu.pipeline_mode<synchronous>, transform_indices = @transform_7, window_bounds = array<i64: 256, 128>}, {pipeline_mode = #tpu.pipeline_mode<synchronous>, transform_indices = @transform_8, window_bounds = array<i64: 1, 128>}, {transform_indices = @transform_9, window_bounds = array<i64: 8, 128>}]} {
    %c0 = arith.constant 0 : index
    %c0_0 = arith.constant 0 : index
    %0 = vector.load %arg1[%c0, %c0_0] : memref<8x128xbf16, #tpu.memory_space<vmem>>, vector<8x128xbf16>
    %c0_1 = arith.constant 0 : index
    %c0_2 = arith.constant 0 : index
    %1 = vector.load %arg2[%c0_1, %c0_2] : memref<128x256xbf16, #tpu.memory_space<vmem>>, vector<128x256xbf16>
    %c0_3 = arith.constant 0 : index
    %c0_4 = arith.constant 0 : index
    %2 = vector.load %arg3[%c0_3, %c0_4] : memref<1x256xf32, #tpu.memory_space<vmem>>, vector<1x256xf32>
    %cst = arith.constant dense<0.000000e+00> : vector<8x256xf32>
    %3 = tpu.matmul %0, %1, %cst {dimension_numbers = #tpu.dot_dimension_numbers<[1], [0], [0], [1], [0, 0, 1, 1], [], []>} : vector<8x128xbf16>, vector<128x256xbf16>, vector<8x256xf32> -> vector<8x256xf32>
    %4 = vector.broadcast %2 : vector<1x256xf32> to vector<8x256xf32>
    %5 = arith.addf %3, %4 : vector<8x256xf32>
    %cst_5 = arith.constant 0.000000e+00 : f32
    %6 = vector.broadcast %cst_5 : f32 to vector<8x256xf32>
    %7 = arith.maximumf %5, %6 : vector<8x256xf32>
    %c0_6 = arith.constant 0 : index
    %c0_7 = arith.constant 0 : index
    %8 = vector.load %arg4[%c0_6, %c0_7] : memref<256x256xbf16, #tpu.memory_space<vmem>>, vector<256x256xbf16>
    %c0_8 = arith.constant 0 : index
    %c0_9 = arith.constant 0 : index
    %9 = vector.load %arg5[%c0_8, %c0_9] : memref<1x256xf32, #tpu.memory_space<vmem>>, vector<1x256xf32>
    %10 = arith.truncf %7 : vector<8x256xf32> to vector<8x256xbf16>
    %cst_10 = arith.constant dense<0.000000e+00> : vector<8x256xf32>
    %11 = tpu.matmul %10, %8, %cst_10 {dimension_numbers = #tpu.dot_dimension_numbers<[1], [0], [0], [1], [0, 0, 1, 1], [], []>} : vector<8x256xbf16>, vector<256x256xbf16>, vector<8x256xf32> -> vector<8x256xf32>
    %12 = vector.broadcast %9 : vector<1x256xf32> to vector<8x256xf32>
    %13 = arith.addf %11, %12 : vector<8x256xf32>
    %cst_11 = arith.constant 0.000000e+00 : f32
    %14 = vector.broadcast %cst_11 : f32 to vector<8x256xf32>
    %15 = arith.maximumf %13, %14 : vector<8x256xf32>
    %c0_12 = arith.constant 0 : index
    %c0_13 = arith.constant 0 : index
    %16 = vector.load %arg6[%c0_12, %c0_13] : memref<256x256xbf16, #tpu.memory_space<vmem>>, vector<256x256xbf16>
    %c0_14 = arith.constant 0 : index
    %c0_15 = arith.constant 0 : index
    %17 = vector.load %arg7[%c0_14, %c0_15] : memref<1x256xf32, #tpu.memory_space<vmem>>, vector<1x256xf32>
    %18 = arith.truncf %15 : vector<8x256xf32> to vector<8x256xbf16>
    %cst_16 = arith.constant dense<0.000000e+00> : vector<8x256xf32>
    %19 = tpu.matmul %18, %16, %cst_16 {dimension_numbers = #tpu.dot_dimension_numbers<[1], [0], [0], [1], [0, 0, 1, 1], [], []>} : vector<8x256xbf16>, vector<256x256xbf16>, vector<8x256xf32> -> vector<8x256xf32>
    %20 = vector.broadcast %17 : vector<1x256xf32> to vector<8x256xf32>
    %21 = arith.addf %19, %20 : vector<8x256xf32>
    %cst_17 = arith.constant 0.000000e+00 : f32
    %22 = vector.broadcast %cst_17 : f32 to vector<8x256xf32>
    %23 = arith.maximumf %21, %22 : vector<8x256xf32>
    %c0_18 = arith.constant 0 : index
    %c0_19 = arith.constant 0 : index
    %24 = vector.load %arg8[%c0_18, %c0_19] : memref<256x128xbf16, #tpu.memory_space<vmem>>, vector<256x128xbf16>
    %c0_20 = arith.constant 0 : index
    %c0_21 = arith.constant 0 : index
    %25 = vector.load %arg9[%c0_20, %c0_21] : memref<1x128xf32, #tpu.memory_space<vmem>>, vector<1x128xf32>
    %26 = arith.truncf %23 : vector<8x256xf32> to vector<8x256xbf16>
    %cst_22 = arith.constant dense<0.000000e+00> : vector<8x128xf32>
    %27 = tpu.matmul %26, %24, %cst_22 {dimension_numbers = #tpu.dot_dimension_numbers<[1], [0], [0], [1], [0, 0, 1, 1], [], []>} : vector<8x256xbf16>, vector<256x128xbf16>, vector<8x128xf32> -> vector<8x128xf32>
    %28 = vector.broadcast %25 : vector<1x128xf32> to vector<8x128xf32>
    %29 = arith.addf %27, %28 : vector<8x128xf32>
    %c0_23 = arith.constant 0 : index
    %c0_24 = arith.constant 0 : index
    %30 = vector.load %arg10[%c0_23, %c0_24] : memref<8x128xf32, #tpu.memory_space<vmem>>, vector<8x128xf32>
    tpu.vector_store %arg10[%c0_23, %c0_24], %29 {strides = array<i32>} : memref<8x128xf32, #tpu.memory_space<vmem>>, vector<8x128xf32>,
    return
  }
  func.func @transform_0(%arg0: i32) -> (i32, i32) {
    %c0_i32 = arith.constant 0 : i32
    %c0_i32_0 = arith.constant 0 : i32
    return %arg0, %c0_i32 : i32, i32
  }
  func.func @transform_1(%arg0: i32) -> (i32, i32) {
    %c0_i32 = arith.constant 0 : i32
    %c0_i32_0 = arith.constant 0 : i32
    %c0_i32_1 = arith.constant 0 : i32
    return %c0_i32, %c0_i32_0 : i32, i32
  }
  func.func @transform_2(%arg0: i32) -> (i32, i32) {
    %c0_i32 = arith.constant 0 : i32
    %c0_i32_0 = arith.constant 0 : i32
    %c0_i32_1 = arith.constant 0 : i32
    return %c0_i32, %c0_i32_0 : i32, i32
  }
  func.func @transform_3(%arg0: i32) -> (i32, i32) {
    %c0_i32 = arith.constant 0 : i32
    %c0_i32_0 = arith.constant 0 : i32
    %c0_i32_1 = arith.constant 0 : i32
    return %c0_i32, %c0_i32_0 : i32, i32
  }
  func.func @transform_4(%arg0: i32) -> (i32, i32) {
    %c0_i32 = arith.constant 0 : i32
    %c0_i32_0 = arith.constant 0 : i32
    %c0_i32_1 = arith.constant 0 : i32
    return %c0_i32, %c0_i32_0 : i32, i32
  }
  func.func @transform_5(%arg0: i32) -> (i32, i32) {
    %c0_i32 = arith.constant 0 : i32
    %c0_i32_0 = arith.constant 0 : i32
    %c0_i32_1 = arith.constant 0 : i32
    return %c0_i32, %c0_i32_0 : i32, i32
  }
  func.func @transform_6(%arg0: i32) -> (i32, i32) {
    %c0_i32 = arith.constant 0 : i32
    %c0_i32_0 = arith.constant 0 : i32
    %c0_i32_1 = arith.constant 0 : i32
    return %c0_i32, %c0_i32_0 : i32, i32
  }
  func.func @transform_7(%arg0: i32) -> (i32, i32) {
    %c0_i32 = arith.constant 0 : i32
    %c0_i32_0 = arith.constant 0 : i32
    %c0_i32_1 = arith.constant 0 : i32
    return %c0_i32, %c0_i32_0 : i32, i32
  }
  func.func @transform_8(%arg0: i32) -> (i32, i32) {
    %c0_i32 = arith.constant 0 : i32
    %c0_i32_0 = arith.constant 0 : i32
    %c0_i32_1 = arith.constant 0 : i32
    return %c0_i32, %c0_i32_0 : i32, i32
  }
  func.func @transform_9(%arg0: i32) -> (i32, i32) {
    %c0_i32 = arith.constant 0 : i32
    %c0_i32_0 = arith.constant 0 : i32
    return %arg0, %c0_i32 : i32, i32
  }
}

</mosaic_0001>

<bundles_post_ra>
// kernel: net_forward.1
= control target key start
LH: loop header
LB: loop body
LE: loop exit
PB: predicated region body
PF: predicated region fallthrough
CT: control target
= control target key end

     0   :  { %v1121_v1 = vmov 0   ;;  %s1488_s1 = inlined_call_operand.vmem [shape: bf16[128,256], index: 1, kind: input, shape index: {}]   ;;  %s1489_s3 = inlined_call_operand.vmem [shape: bf16[256,256], index: 3, kind: input, shape index: {}]   ;;  %s1490_s0 = inlined_call_operand.vmem [shape: bf16[8,128], index: 0, kind: input, shape index: {}]   ;;  %s1491_s5 = inlined_call_operand.vmem [shape: bf16[256,256], index: 5, kind: input, shape index: {}]   ;;  %s1492_s2 = inlined_call_operand.vmem [shape: f32[1,256], index: 2, kind: input, shape index: {}]   ;;  %s1493_s7 = inlined_call_operand.vmem [shape: bf16[256,128], index: 7, kind: input, shape index: {}]   ;;  %s1494_s4 = inlined_call_operand.vmem [shape: f32[1,256], index: 4, kind: input, shape index: {}]   ;;  %s1495_s6 = inlined_call_operand.vmem [shape: f32[1,256], index: 6, kind: input, shape index: {}]   ;;  %s1496_s8 = inlined_call_operand.vmem [shape: f32[1,128], index: 8, kind: input, shape index: {}]   ;;  %s1497_s9 = inlined_call_operand.vmem [shape: f32[8,128], index: 9, kind: output, shape index: {}]  }
   0x1   :  { %v985_v0 = vld [vmem:[%s1488_s1 + $0x4] ss:$8 sps:$4 sm:$0xff]   ;;  %174 = vmatprep.mubr.bf16.mxu0 %v1121_v1  ;;  %v987_v2 = vld [vmem:[%s1488_s1] ss:$8 sps:$4 sm:$0xff]   ;;  %v988_v3 = vld [vmem:[%s1488_s1 + $0x14] ss:$8 sps:$4 sm:$0xff]  }
   0x2   :  { %142 = vmatprep.subr.bf16.mxu0 %v985_v0  ;;  %v990_v4 = vld [vmem:[%s1488_s1 + $0x10] ss:$8 sps:$4 sm:$0xff]   ;;  %v991_v5 = vld [vmem:[%s1488_s1 + $0x24] ss:$8 sps:$4 sm:$0xff]   ;;  %v993_v6 = vld [vmem:[%s1488_s1 + $0x20] ss:$8 sps:$4 sm:$0xff]  }
   0x3   :  { %143 = vmatpush1.bf16.msra.mxu0 %v987_v2  ;;  %v994_v7 = vld [vmem:[%s1488_s1 + $0x34] ss:$8 sps:$4 sm:$0xff]   ;;  %v996_v8 = vld [vmem:[%s1488_s1 + $0x30] ss:$8 sps:$4 sm:$0xff]   ;;  %v997_v9 = vld [vmem:[%s1488_s1 + $0x44] ss:$8 sps:$4 sm:$0xff]  }
   0x4   :  { %144 = vmatprep.subr.bf16.mxu0 %v988_v3  ;;  %v1009_v10 = vld [vmem:[%s1489_s3 + $0x4] ss:$8 sps:$4 sm:$0xff]   ;;  %v1011_v11 = vld [vmem:[%s1489_s3] ss:$8 sps:$4 sm:$0xff]   ;;  %v1012_v12 = vld [vmem:[%s1489_s3 + $0x14] ss:$8 sps:$4 sm:$0xff]  }
   0x5   :  { %391 = vmatprep.subr.bf16.mxu1 %v1009_v10  ;;  %v999_v13 = vld [vmem:[%s1488_s1 + $0x40] ss:$8 sps:$4 sm:$0xff]   ;;  %v1014_v14 = vld [vmem:[%s1489_s3 + $0x10] ss:$8 sps:$4 sm:$0xff]   ;;  %v1015_v15 = vld [vmem:[%s1489_s3 + $0x24] ss:$8 sps:$4 sm:$0xff]  }
   0x6   :  { %392 = vmatpush1.bf16.msra.mxu1 %v1011_v11  ;;  %v1000_v16 = vld [vmem:[%s1488_s1 + $0x54] ss:$8 sps:$4 sm:$0xff]   ;;  %v1002_v17 = vld [vmem:[%s1488_s1 + $0x50] ss:$8 sps:$4 sm:$0xff]   ;;  %v1017_v18 = vld [vmem:[%s1489_s3 + $0x20] ss:$8 sps:$4 sm:$0xff]  }
   0x7   :  { %145 = vmatpush1.bf16.msra.mxu0 %v990_v4  ;;  %393 = vmatprep.subr.bf16.mxu1 %v1012_v12  ;;  %v1018_v19 = vld [vmem:[%s1489_s3 + $0x34] ss:$8 sps:$4 sm:$0xff]   ;;  %v1003_v20 = vld [vmem:[%s1488_s1 + $0x64] ss:$8 sps:$4 sm:$0xff]   ;;  %v1005_v21 = vld [vmem:[%s1488_s1 + $0x60] ss:$8 sps:$4 sm:$0xff]  }
   0x8   :  { %146 = vmatprep.subr.bf16.mxu0 %v991_v5  ;;  %v1020_v22 = vld [vmem:[%s1489_s3 + $0x30] ss:$8 sps:$4 sm:$0xff]   ;;  %v1021_v23 = vld [vmem:[%s1489_s3 + $0x44] ss:$8 sps:$4 sm:$0xff]   ;;  %v1006_v24 = vld [vmem:[%s1488_s1 + $0x74] ss:$8 sps:$4 sm:$0xff]  }
   0x9   :  { %v1008_v25 = vld [vmem:[%s1488_s1 + $0x70] ss:$8 sps:$4 sm:$0xff]   ;;  %v1023_v26 = vld [vmem:[%s1489_s3 + $0x40] ss:$8 sps:$4 sm:$0xff]   ;;  %v1024_v27 = vld [vmem:[%s1489_s3 + $0x54] ss:$8 sps:$4 sm:$0xff]  }
   0xa   :  { %394 = vmatpush1.bf16.msra.mxu1 %v1014_v14  ;;  %v1026_v28 = vld [vmem:[%s1489_s3 + $0x50] ss:$8 sps:$4 sm:$0xff]   ;;  %v33_v29 = vld [vmem:[%s1490_s0] sm:$0xf]  ;;  %v1027_v30 = vld [vmem:[%s1489_s3 + $0x64] ss:$8 sps:$4 sm:$0xff]   ;;  %v52_v14 = vlaneseq }
   0xb   :  { %147 = vmatpush1.bf16.msra.mxu0 %v993_v6  ;;  %395 = vmatprep.subr.bf16.mxu1 %v1015_v15  ;;  %v1029_v31 = vld [vmem:[%s1489_s3 + $0x60] ss:$8 sps:$4 sm:$0xff]   ;;  %v1030_v32 = vld [vmem:[%s1489_s3 + $0x74] ss:$8 sps:$4 sm:$0xff]   ;;  %v1032_v33 = vld [vmem:[%s1489_s3 + $0x70] ss:$8 sps:$4 sm:$0xff]  }
   0xc   :  { %148 = vmatprep.subr.bf16.mxu0 %v994_v7  ;;  %v1033_v34 = vld [vmem:[%s1489_s3 + $0x84] ss:$8 sps:$4 sm:$0xff]   ;;  %v1035_v35 = vld [vmem:[%s1489_s3 + $0x80] ss:$8 sps:$4 sm:$0xff]   ;;  %v1036_v36 = vld [vmem:[%s1489_s3 + $0x94] ss:$8 sps:$4 sm:$0xff]  }
   0xd   :  { %v1038_v37 = vld [vmem:[%s1489_s3 + $0x90] ss:$8 sps:$4 sm:$0xff]   ;;  %v1039_v38 = vld [vmem:[%s1489_s3 + $0xa4] ss:$8 sps:$4 sm:$0xff]   ;;  %v1041_v39 = vld [vmem:[%s1489_s3 + $0xa0] ss:$8 sps:$4 sm:$0xff]  }
   0xe   :  { %396 = vmatpush1.bf16.msra.mxu1 %v1017_v18  ;;  %v1042_v40 = vld [vmem:[%s1489_s3 + $0xb4] ss:$8 sps:$4 sm:$0xff]   ;;  %v1044_v41 = vld [vmem:[%s1489_s3 + $0xb0] ss:$8 sps:$4 sm:$0xff]   ;;  %v1045_v42 = vld [vmem:[%s1489_s3 + $0xc4] ss:$8 sps:$4 sm:$0xff]  }
   0xf   :  { %149 = vmatpush1.bf16.msra.mxu0 %v996_v8  ;;  %397 = vmatprep.subr.bf16.mxu1 %v1018_v19  ;;  %v1047_v43 = vld [vmem:[%s1489_s3 + $0xc0] ss:$8 sps:$4 sm:$0xff]   ;;  %v1048_v44 = vld [vmem:[%s1489_s3 + $0xd4] ss:$8 sps:$4 sm:$0xff]   ;;  %v1050_v45 = vld [vmem:[%s1489_s3 + $0xd0] ss:$8 sps:$4 sm:$0xff]  }
  0x10   :  { %150 = vmatprep.subr.bf16.mxu0 %v997_v9  ;;  %v1051_v46 = vld [vmem:[%s1489_s3 + $0xe4] ss:$8 sps:$4 sm:$0xff]   ;;  %v1053_v47 = vld [vmem:[%s1489_s3 + $0xe0] ss:$8 sps:$4 sm:$0xff]   ;;  %v1054_v48 = vld [vmem:[%s1489_s3 + $0xf4] ss:$8 sps:$4 sm:$0xff]  }
  0x11   :  { %v1056_v49 = vld [vmem:[%s1489_s3 + $0xf0] ss:$8 sps:$4 sm:$0xff]   ;;  %v1057_v50 = vld [vmem:[%s1491_s5] ss:$8 sps:$4 sm:$0xff]   ;;  %v1059_v51 = vld [vmem:[%s1491_s5 + $0x4] ss:$8 sps:$4 sm:$0xff]  }
  0x12   :  { %398 = vmatpush1.bf16.msra.mxu1 %v1020_v22  ;;  %v1062_v52 = vld [vmem:[%s1491_s5 + $0x14] ss:$8 sps:$4 sm:$0xff]   ;;  %v1060_v53 = vld [vmem:[%s1491_s5 + $0x10] ss:$8 sps:$4 sm:$0xff]   ;;  %v1065_v54 = vld [vmem:[%s1491_s5 + $0x24] ss:$8 sps:$4 sm:$0xff]  }
  0x13   :  { %151 = vmatpush1.bf16.msra.mxu0 %v999_v13  ;;  %399 = vmatprep.subr.bf16.mxu1 %v1021_v23  ;;  %v1063_v55 = vld [vmem:[%s1491_s5 + $0x20] ss:$8 sps:$4 sm:$0xff]   ;;  %v1068_v56 = vld [vmem:[%s1491_s5 + $0x34] ss:$8 sps:$4 sm:$0xff]   ;;  %v1066_v57 = vld [vmem:[%s1491_s5 + $0x30] ss:$8 sps:$4 sm:$0xff]  }
  0x14   :  { %152 = vmatprep.subr.bf16.mxu0 %v1000_v16  ;;  %v1071_v58 = vld [vmem:[%s1491_s5 + $0x44] ss:$8 sps:$4 sm:$0xff]   ;;  %v1069_v59 = vld [vmem:[%s1491_s5 + $0x40] ss:$8 sps:$4 sm:$0xff]   ;;  %v1074_v60 = vld [vmem:[%s1491_s5 + $0x54] ss:$8 sps:$4 sm:$0xff]  }
  0x15   :  { %v1072_v61 = vld [vmem:[%s1491_s5 + $0x50] ss:$8 sps:$4 sm:$0xff]   ;;  %v1077_v62 = vld [vmem:[%s1491_s5 + $0x64] ss:$8 sps:$4 sm:$0xff]   ;;  %v1075_v63 = vld [vmem:[%s1491_s5 + $0x60] ss:$8 sps:$4 sm:$0xff]  }
  0x16   :  { %400 = vmatpush1.bf16.msra.mxu1 %v1023_v26  ;;  %v1080_v0 = vld [vmem:[%s1491_s5 + $0x74] ss:$8 sps:$4 sm:$0xff]   ;;  %v1078_v1 = vld [vmem:[%s1491_s5 + $0x70] ss:$8 sps:$4 sm:$0xff]   ;;  %v1083_v2 = vld [vmem:[%s1491_s5 + $0x84] ss:$8 sps:$4 sm:$0xff]  }
  0x17   :  { %153 = vmatpush1.bf16.msra.mxu0 %v1002_v17  ;;  %401 = vmatprep.subr.bf16.mxu1 %v1024_v27  ;;  %v1081_v3 = vld [vmem:[%s1491_s5 + $0x80] ss:$8 sps:$4 sm:$0xff]   ;;  %v1086_v4 = vld [vmem:[%s1491_s5 + $0x94] ss:$8 sps:$4 sm:$0xff]   ;;  %v1084_v5 = vld [vmem:[%s1491_s5 + $0x90] ss:$8 sps:$4 sm:$0xff]  }
  0x18   :  { %154 = vmatprep.subr.bf16.mxu0 %v1003_v20  ;;  %v1089_v6 = vld [vmem:[%s1491_s5 + $0xa4] ss:$8 sps:$4 sm:$0xff]   ;;  %v1087_v7 = vld [vmem:[%s1491_s5 + $0xa0] ss:$8 sps:$4 sm:$0xff]   ;;  %v1092_v8 = vld [vmem:[%s1491_s5 + $0xb4] ss:$8 sps:$4 sm:$0xff]  }
  0x19   :  { %v1090_v9 = vld [vmem:[%s1491_s5 + $0xb0] ss:$8 sps:$4 sm:$0xff]   ;;  %v1095_v10 = vld [vmem:[%s1491_s5 + $0xc4] ss:$8 sps:$4 sm:$0xff]   ;;  %v1093_v11 = vld [vmem:[%s1491_s5 + $0xc0] ss:$8 sps:$4 sm:$0xff]  }
  0x1a   :  { %402 = vmatpush1.bf16.msra.mxu1 %v1026_v28  ;;  %v1098_v12 = vld [vmem:[%s1491_s5 + $0xd4] ss:$8 sps:$4 sm:$0xff]   ;;  %v1096_v13 = vld [vmem:[%s1491_s5 + $0xd0] ss:$8 sps:$4 sm:$0xff]   ;;  %v53_v15 = vshrl.u32 %v52_v14, 7 }
  0x1b   :  { %155 = vmatpush1.bf16.msra.mxu0 %v1005_v21  ;;  %403 = vmatprep.subr.bf16.mxu1 %v1027_v30  ;;  %v50_v17 = vld [vmem:[%s1492_s2] sm:$0x3] }
  0x1c   :  { %156 = vmatprep.subr.bf16.mxu0 %v1006_v24  ;;  %v1403_v16 = vsub.s32 0, %v53_v15  ;;  %v1408_v18 = vsub.s32 1, %v53_v15  ;;  %v945_v14 = vld [vmem:[%s1496_s8] ss:$0 sm:$0xff] }
  0x1e   :  { %404 = vmatpush1.bf16.msra.mxu1 %v1029_v31  ;;  %v55_v19 = vrot.slane %v50_v17, %v1403_v16  ;;  %v59_v20 = vrot.slane %v50_v17, %v1408_v18  ;;  %v1101_v31 = vld [vmem:[%s1491_s5 + $0xe4] ss:$8 sps:$4 sm:$0xff]  }
  0x1f   :  { %157 = vmatpush1.bf16.msra.mxu0 %v1008_v25  ;;  %405 = vmatprep.subr.bf16.mxu1 %v1030_v32  ;;  %v1099_v32 = vld [vmem:[%s1491_s5 + $0xe0] ss:$8 sps:$4 sm:$0xff]  }
  0x20   :  { %640 = vmatprep.subr.bf16.mxu0 %v1059_v51 }
  0x22   :  { %175 = vmatmul.mubr.bf16.vlgmr.msra.gmra.mrb[0].mxu0 %v33_v29  ;;  %406 = vmatpush1.bf16.msra.mxu1 %v1032_v33  ;;  %v1104_v33 = vld [vmem:[%s1491_s5 + $0xf4] ss:$8 sps:$4 sm:$0xff]  }
  0x23   :  { %407 = vmatprep.subr.bf16.mxu1 %v1033_v34  ;;  %641 = vmatpush1.bf16.msra.mxu0 %v1057_v50  ;;  %v1102_v34 = vld [vmem:[%s1491_s5 + $0xf0] ss:$8 sps:$4 sm:$0xff]  }
  0x24   :  { %642 = vmatprep.subr.bf16.mxu0 %v1062_v52 }
  0x26   :  { %408 = vmatpush1.bf16.msra.mxu1 %v1035_v35  ;;  %v1105_v35 = vld [vmem:[%s1493_s7 + $0x40] sm:$0xff]  }
  0x27   :  { %409 = vmatprep.subr.bf16.mxu1 %v1036_v36  ;;  %643 = vmatpush1.bf16.msra.mxu0 %v1060_v53  ;;  %v1106_v36 = vld [vmem:[%s1493_s7] sm:$0xff]  }
  0x28   :  { %644 = vmatprep.subr.bf16.mxu0 %v1065_v54 }
  0x2a   :  { %410 = vmatpush1.bf16.msra.mxu1 %v1038_v37  ;;  %v1107_v37 = vld [vmem:[%s1493_s7 + $0x48] sm:$0xff]  }
  0x2b   :  { %411 = vmatprep.subr.bf16.mxu1 %v1039_v38  ;;  %645 = vmatpush1.bf16.msra.mxu0 %v1063_v55  ;;  %v1108_v38 = vld [vmem:[%s1493_s7 + $0x8] sm:$0xff]  }
  0x2c   :  { %646 = vmatprep.subr.bf16.mxu0 %v1068_v56 }
  0x2e   :  { %412 = vmatpush1.bf16.msra.mxu1 %v1041_v39  ;;  %v1109_v39 = vld [vmem:[%s1493_s7 + $0x50] sm:$0xff]  }
  0x2f   :  { %413 = vmatprep.subr.bf16.mxu1 %v1042_v40  ;;  %647 = vmatpush1.bf16.msra.mxu0 %v1066_v57  ;;  %v1110_v40 = vld [vmem:[%s1493_s7 + $0x10] sm:$0xff]  }
  0x30   :  { %648 = vmatprep.subr.bf16.mxu0 %v1071_v58 }
  0x32   :  { %414 = vmatpush1.bf16.msra.mxu1 %v1044_v41  ;;  %v1111_v41 = vld [vmem:[%s1493_s7 + $0x58] sm:$0xff]  }
  0x33   :  { %415 = vmatprep.subr.bf16.mxu1 %v1045_v42  ;;  %649 = vmatpush1.bf16.msra.mxu0 %v1069_v59  ;;  %v1112_v42 = vld [vmem:[%s1493_s7 + $0x18] sm:$0xff]  }
  0x34   :  { %650 = vmatprep.subr.bf16.mxu0 %v1074_v60  ;;  %v1117_v60 = vld [vmem:[%s1493_s7 + $0x70] sm:$0xff]  }
  0x36   :  { %416 = vmatpush1.bf16.msra.mxu1 %v1047_v43  ;;  %v1113_v43 = vld [vmem:[%s1493_s7 + $0x60] sm:$0xff]  }
  0x37   :  { %417 = vmatprep.subr.bf16.mxu1 %v1048_v44  ;;  %651 = vmatpush1.bf16.msra.mxu0 %v1072_v61  ;;  %v1114_v44 = vld [vmem:[%s1493_s7 + $0x20] sm:$0xff]   ;;  %v1118_v61 = vld [vmem:[%s1493_s7 + $0x30] sm:$0xff]  }
  0x38   :  { %652 = vmatprep.subr.bf16.mxu0 %v1077_v62  ;;  %v1119_v62 = vld [vmem:[%s1493_s7 + $0x78] sm:$0xff]  }
  0x3a   :  { %418 = vmatpush1.bf16.msra.mxu1 %v1050_v45  ;;  %v1115_v45 = vld [vmem:[%s1493_s7 + $0x68] sm:$0xff]  }
  0x3b   :  { %419 = vmatprep.subr.bf16.mxu1 %v1051_v46  ;;  %653 = vmatpush1.bf16.msra.mxu0 %v1075_v63  ;;  %v1116_v46 = vld [vmem:[%s1493_s7 + $0x28] sm:$0xff]   ;;  %v1120_v63 = vld [vmem:[%s1493_s7 + $0x38] sm:$0xff]  }
  0x3c   :  { %654 = vmatprep.subr.bf16.mxu0 %v1080_v0  ;;  %v466_v0 = vld [vmem:[%s1495_s6] sm:$0x3] }
  0x3e   :  { %420 = vmatpush1.bf16.msra.mxu1 %v1053_v47  ;;  %v217_v47 = vld [vmem:[%s1494_s4] sm:$0x3] }
  0x3f   :  { %421 = vmatprep.subr.bf16.mxu1 %v1054_v48  ;;  %655 = vmatpush1.bf16.msra.mxu0 %v1078_v1  ;;  %v224_v48 = vrot.slane %v217_v47, %v1403_v16  ;;  %v473_v1 = vrot.slane %v466_v0, %v1403_v16 }
  0x40   :  { %656 = vmatprep.subr.bf16.mxu0 %v1083_v2  ;;  %v477_v2 = vrot.slane %v466_v0, %v1408_v18 }
  0x42   :  { %422 = vmatpush1.bf16.msra.mxu1 %v1056_v49  ;;  %v228_v49 = vrot.slane %v217_v47, %v1408_v18 }
  0x43   :  { %657 = vmatpush1.bf16.msra.mxu0 %v1081_v3  ;;  %962 = vmatprep.subr.bf16.mxu1 %v1105_v35 }
  0x44   :  { %658 = vmatprep.subr.bf16.mxu0 %v1086_v4 }
  0x47   :  { %659 = vmatpush1.bf16.msra.mxu0 %v1084_v5 }
  0x48   :  { %660 = vmatprep.subr.bf16.mxu0 %v1089_v6 }
  0x4b   :  { %661 = vmatpush1.bf16.msra.mxu0 %v1087_v7 }
  0x4c   :  { %662 = vmatprep.subr.bf16.mxu0 %v1092_v8 }
  0x4f   :  { %663 = vmatpush1.bf16.msra.mxu0 %v1090_v9 }
  0x50   :  { %664 = vmatprep.subr.bf16.mxu0 %v1095_v10 }
  0x53   :  { %665 = vmatpush1.bf16.msra.mxu0 %v1093_v11 }
  0x54   :  { %666 = vmatprep.subr.bf16.mxu0 %v1098_v12 }
  0x57   :  { %667 = vmatpush1.bf16.msra.mxu0 %v1096_v13 }
  0x58   :  { %668 = vmatprep.subr.bf16.mxu0 %v1101_v31 }
  0x5b   :  { %669 = vmatpush1.bf16.msra.mxu0 %v1099_v32 }
  0x5c   :  { %670 = vmatprep.subr.bf16.mxu0 %v1104_v33 }
  0x5f   :  { %671 = vmatpush1.bf16.msra.mxu0 %v1102_v34 }
  0xf5   :  { %v176_v21 = vpop.f32.mrb[0].mxu0 }
  0xf6   :  { %v177_v22 = vadd.f32 %v176_v21, %v55_v19  ;;  %v178_v23 = vpop.f32.mrb[1].mxu0 }
  0xf7   :  { %v179_v24 = vadd.f32 %v178_v23, %v59_v20  ;;  %v180_v25 = vpop.f32.mrb[2].mxu0 }
  0xf8   :  { %v183_v26 = vmax.f32 %v177_v22, 0.0  ;;  %v181_v27 = vpop.f32.mrb[3].mxu0 }
  0xf9   :  { %v184_v28 = vmax.f32 %v179_v24, 0.0 }
  0xfa   :  { %v218_v30 = vpack.c.bf16 %v183_v26, %v183_v26 }
  0xfb   :  { %v219_v29 = vpack.c.bf16 %v184_v28, %v184_v28 }
  0xfd   :  { %423 = vmatprep.mubr.bf16.mxu1 %v219_v29 }
  0xfe   :  { %424 = vmatmul.mubr.bf16.vlgmr.msra.gmra.mrb[0].mxu1 %v218_v30 }
  0xff   :  { %963 = vmatpush3.bf16.msra.mxu1 %v1106_v36 }
 0x100   :  { %964 = vmatprep.subr.bf16.mxu1 %v1107_v37 }
 0x103   :  { %965 = vmatpush3.bf16.msra.mxu1 %v1108_v38 }
 0x104   :  { %966 = vmatprep.subr.bf16.mxu1 %v1109_v39 }
 0x107   :  { %967 = vmatpush3.bf16.msra.mxu1 %v1110_v40 }
 0x108   :  { %968 = vmatprep.subr.bf16.mxu1 %v1111_v41 }
 0x10b   :  { %969 = vmatpush3.bf16.msra.mxu1 %v1112_v42 }
 0x10c   :  { %970 = vmatprep.subr.bf16.mxu1 %v1113_v43 }
 0x10f   :  { %971 = vmatpush3.bf16.msra.mxu1 %v1114_v44 }
 0x110   :  { %972 = vmatprep.subr.bf16.mxu1 %v1115_v45 }
 0x113   :  { %973 = vmatpush3.bf16.msra.mxu1 %v1116_v46 }
 0x114   :  { %974 = vmatprep.subr.bf16.mxu1 %v1117_v60 }
 0x117   :  { %975 = vmatpush3.bf16.msra.mxu1 %v1118_v61 }
 0x118   :  { %976 = vmatprep.subr.bf16.mxu1 %v1119_v62 }
 0x11b   :  { %977 = vmatpush3.bf16.msra.mxu1 %v1120_v63 }
 0x1d1   :  { %v425_v50 = vpop.f32.mrb[0].mxu1 }
 0x1d2   :  { %v426_v51 = vadd.f32 %v425_v50, %v224_v48  ;;  %v427_v52 = vpop.f32.mrb[1].mxu1 }
 0x1d3   :  { %v428_v53 = vadd.f32 %v427_v52, %v228_v49  ;;  %v429_v54 = vpop.f32.mrb[2].mxu1 }
 0x1d4   :  { %v432_v55 = vmax.f32 %v426_v51, 0.0  ;;  %v430_v56 = vpop.f32.mrb[3].mxu1 }
 0x1d5   :  { %v433_v57 = vmax.f32 %v428_v53, 0.0 }
 0x1d6   :  { %v467_v59 = vpack.c.bf16 %v432_v55, %v432_v55 }
 0x1d7   :  { %v468_v58 = vpack.c.bf16 %v433_v57, %v433_v57 }
 0x1d9   :  { %672 = vmatprep.mubr.bf16.mxu0 %v468_v58 }
 0x1da   :  { %673 = vmatmul.mubr.bf16.vlgmr.msra.gmra.mrb[4].mxu0 %v467_v59 }
 0x2ad   :  { %v674_v3 = vpop.f32.mrb[4].mxu0 }
 0x2ae   :  { %v675_v4 = vadd.f32 %v674_v3, %v473_v1  ;;  %v676_v5 = vpop.f32.mrb[5].mxu0 }
 0x2af   :  { %v677_v6 = vadd.f32 %v676_v5, %v477_v2  ;;  %v678_v7 = vpop.f32.mrb[6].mxu0 }
 0x2b0   :  { %v681_v8 = vmax.f32 %v675_v4, 0.0  ;;  %v679_v9 = vpop.f32.mrb[7].mxu0 }
 0x2b1   :  { %v682_v10 = vmax.f32 %v677_v6, 0.0 }
 0x2b2   :  { %v716_v12 = vpack.c.bf16 %v681_v8, %v681_v8 }
 0x2b3   :  { %v717_v11 = vpack.c.bf16 %v682_v10, %v682_v10 }
 0x2b5   :  { %852 = vmatprep.mubr.bf16.mxu1 %v717_v11 }
 0x2b6   :  { %853 = vmatmul.mubr.bf16.vlgmr.msra.gmra.mrb[4].mxu1 %v716_v12 }
 0x389   :  { %v978_v13 = vpop.f32.mrb[4].mxu1 }
 0x38a   :  { %v979_v15 = vpop.f32.mrb[5].mxu1 }
 0x38b   :  { %v980_v16 = vadd.f32 %v979_v15, %v978_v13  ;;  %v981_v17 = vpop.f32.mrb[6].mxu1 }
 0x38c   :  { %v982_v18 = vpop.f32.mrb[7].mxu1 }
 0x38d   :  { %v855_v19 = vadd.f32 %v980_v16, %v945_v14 }
 0x38f   :  { %860 = vst [vmem:[%s1497_s9] sm:$0xff] %v855_v19 }

</bundles_post_ra>
